<compile_context>
chip_gen: v6e
topology: v6e:2x2x1
jax: 0.10.0
libtpu: 0.0.40
codegen_flags: <defaults>
</compile_context>

<pallas_src>
import functools

import jax
import jax.numpy as jnp
from jax import lax
from jax.experimental import pallas as pl
from jax.experimental.pallas import tpu as pltpu


def _bilstm_encoder_kernel(x_ref,    # (T*B, 2I)  bf16, row block t = [x[t] | x[T-1-t]]
                           wi_ref,   # (2I, 8H)   bf16, fused + column-permuted input weights
                           b_ref,    # (1, 8H)    f32, folded + permuted biases
                           wh_ref,   # (2H, 8H)   bf16, fused + column-permuted recurrent weights
                           o_ref,    # (B, 2H)    f32, L2-normalized [h_fwd | h_bwd]
                           *, seq_len, batch, hidden_size):
    T, B, H = seq_len, batch, hidden_size
    H2 = 2 * H  # fused (fwd|bwd) block width

    # --- Hoisted input projection: all timesteps, both directions, one MXU matmul.
    gx_all = (jnp.dot(x_ref[...], wi_ref[...],
                      preferred_element_type=jnp.float32)
              + b_ref[...])                                   # (T*B, 8H) f32

    wh = wh_ref[...]                                          # (2H, 8H) bf16

    # Fused recurrent state: columns [0:H] = forward, [H:2H] = backward.
    h = jnp.zeros((B, H2), jnp.float32)
    c = jnp.zeros((B, H2), jnp.float32)

    # --- Fully-unrolled fused recurrence (T is small & static).
    # TODO(synk): for production T use lax.fori_loop(..., unroll=k) or a grid axis
    # to bound vreg live ranges / code size.
    for t in range(T):
        gates = (jnp.dot(h.astype(jnp.bfloat16), wh,
                         preferred_element_type=jnp.float32)
                 + gx_all[t * B:(t + 1) * B, :])              # (B, 8H) f32

        sg = jax.nn.sigmoid(gates)                            # one EUP pass: i, f, o
        i_g = sg[:, 0:H2]                                     # [i_f | i_b]
        f_g = sg[:, H2:2 * H2]                                # [f_f | f_b]
        o_g = sg[:, 3 * H2:4 * H2]                            # [o_f | o_b]
        g_g = jnp.tanh(gates[:, 2 * H2:3 * H2])               # [g_f | g_b]

        c = f_g * c + i_g * g_g
        h = o_g * jnp.tanh(c)

    # --- out = h / max(||h||_2, 1e-12) via EUP rsqrt; single lane-dense-ish store.
    sq = jnp.sum(h * h, axis=1, keepdims=True)
    inv = lax.rsqrt(jnp.maximum(sq, 1e-24))
    o_ref[...] = (h * inv).astype(o_ref.dtype)


def time_series_encoder(x, params, hidden_size):
    """x: (B, T, I) float32  ->  (B, 2*hidden_size) float32 (L2-normalized)."""
    B, T, I = x.shape
    H = hidden_size
    B_pad = ((B + 7) // 8) * 8                 # fill the 8-row sublane tile

    # Time-major, batch-padded input; fuse [x[t] | x[T-1-t]] along features so one
    # contiguous row block per step feeds both directions.
    x_tbi = jnp.transpose(x, (1, 0, 2)).astype(jnp.float32)   # (T, B, I)
    if B_pad != B:
        x_tbi = jnp.pad(x_tbi, ((0, 0), (0, B_pad - B), (0, 0)))
    x_fused = jnp.concatenate([x_tbi, x_tbi[::-1]], axis=2)   # (T, B_pad, 2I)
    x2d = x_fused.reshape(T * B_pad, 2 * I).astype(jnp.bfloat16)

    # Column permutation: [i_f f_f g_f o_f | i_b f_b g_b o_b] ->
    #                     [i_f i_b | f_f f_b | g_f g_b | o_f o_b]  (blocks of width H).
    blk = jnp.arange(H)
    perm = jnp.concatenate([blk + k * H for k in (0, 4, 1, 5, 2, 6, 3, 7)])

    # Input weights: forward rows use x[t], backward rows use x[T-1-t].
    wi = jnp.zeros((2 * I, 8 * H), jnp.float32)
    wi = wi.at[0:I, 0:4 * H].set(params["w_ih_f"].T)
    wi = wi.at[I:2 * I, 4 * H:8 * H].set(params["w_ih_b"].T)
    wi = wi[:, perm].astype(jnp.bfloat16)

    # Recurrent weights: rows 0:H act on h_fwd, rows H:2H act on h_bwd.
    wh = jnp.zeros((2 * H, 8 * H), jnp.float32)
    wh = wh.at[0:H, 0:4 * H].set(params["w_hh_f"].T)
    wh = wh.at[H:2 * H, 4 * H:8 * H].set(params["w_hh_b"].T)
    wh = wh[:, perm].astype(jnp.bfloat16)

    # Folded biases (b_ih + b_hh per direction), same column permutation.
    b = jnp.concatenate([params["b_ih_f"] + params["b_hh_f"],
                         params["b_ih_b"] + params["b_hh_b"]])[perm]
    b = b.reshape(1, 8 * H).astype(jnp.float32)

    kernel = functools.partial(_bilstm_encoder_kernel,
                               seq_len=T, batch=B_pad, hidden_size=H)
    vmem = pl.BlockSpec(memory_space=pltpu.MemorySpace.VMEM)

    out = pl.pallas_call(
        kernel,
        out_shape=jax.ShapeDtypeStruct((B_pad, 2 * H), jnp.float32),
        in_specs=[vmem] * 4,
        out_specs=vmem,
    )(x2d, wi, b, wh)
    return out[:B]


def _reference_encoder(x, params, hidden_size):
    """Pure-JAX reference matching torch.nn.LSTM (bidirectional) + F.normalize."""
    H = hidden_size

    def run_dir(xs, w_ih, w_hh, b_ih, b_hh):
        def step(carry, x_t):
            h, c = carry
            gates = x_t @ w_ih.T + b_ih + h @ w_hh.T + b_hh
            i_g = jax.nn.sigmoid(gates[:, 0 * H:1 * H])
            f_g = jax.nn.sigmoid(gates[:, 1 * H:2 * H])
            g_g = jnp.tanh(gates[:, 2 * H:3 * H])
            o_g = jax.nn.sigmoid(gates[:, 3 * H:4 * H])
            c = f_g * c + i_g * g_g
            h = o_g * jnp.tanh(c)
            return (h, c), None

        B = xs.shape[1]
        h0 = jnp.zeros((B, H), jnp.float32)
        (h, _), _ = lax.scan(step, (h0, h0), xs)
        return h

    xs = jnp.transpose(x, (1, 0, 2))
    h_f = run_dir(xs, params["w_ih_f"], params["w_hh_f"],
                  params["b_ih_f"], params["b_hh_f"])
    h_b = run_dir(xs[::-1], params["w_ih_b"], params["w_hh_b"],
                  params["b_ih_b"], params["b_hh_b"])
    h = jnp.concatenate([h_f, h_b], axis=1)
    norm = jnp.maximum(jnp.linalg.norm(h, axis=1, keepdims=True), 1e-12)
    return h / norm


if __name__ == "__main__":
    # Small shapes consistent with the module: batch=4, seq=8, input_size=16, hidden=32.
    B, T, I, H = 4, 8, 16, 32

    key = jax.random.PRNGKey(0)
    keys = jax.random.split(key, 9)
    bound = 1.0 / jnp.sqrt(H)  # PyTorch LSTM default init: U(-1/sqrt(H), 1/sqrt(H))

    def u(k, shape):
        return jax.random.uniform(k, shape, jnp.float32, -bound, bound)

    params = {
        "w_ih_f": u(keys[0], (4 * H, I)),
        "w_hh_f": u(keys[1], (4 * H, H)),
        "b_ih_f": u(keys[2], (4 * H,)),
        "b_hh_f": u(keys[3], (4 * H,)),
        "w_ih_b": u(keys[4], (4 * H, I)),
        "w_hh_b": u(keys[5], (4 * H, H)),
        "b_ih_b": u(keys[6], (4 * H,)),
        "b_hh_b": u(keys[7], (4 * H,)),
    }
    x = jax.random.normal(keys[8], (B, T, I), jnp.float32)

    out = time_series_encoder(x, params, H)
    out = jax.block_until_ready(out)

    ref = jax.block_until_ready(_reference_encoder(x, params, H))
    assert out.shape == (B, 2 * H)
    assert jnp.allclose(out, ref, rtol=1e-2, atol=1e-2), "mismatch vs reference"

    print("KERNEL_OK")
</pallas_src>

<mosaic_0001>
module attributes {stable_mosaic.version = 11 : i64} {
  func.func @_bilstm_encoder_kernel(%arg0: memref<64x32xbf16, #tpu.memory_space<vmem>>, %arg1: memref<32x256xbf16, #tpu.memory_space<vmem>>, %arg2: memref<1x256xf32, #tpu.memory_space<vmem>>, %arg3: memref<64x256xbf16, #tpu.memory_space<vmem>>, %arg4: memref<8x64xf32, #tpu.memory_space<vmem>>) attributes {dimension_semantics = [], scalar_prefetch = 0 : i64, scratch_operands = 0 : i64, tpu.core_type = #tpu.core_type<tc>} {
    %c0 = arith.constant 0 : index
    %c0_0 = arith.constant 0 : index
    %0 = vector.load %arg0[%c0, %c0_0] : memref<64x32xbf16, #tpu.memory_space<vmem>>, vector<64x32xbf16>
    %c0_1 = arith.constant 0 : index
    %c0_2 = arith.constant 0 : index
    %1 = vector.load %arg1[%c0_1, %c0_2] : memref<32x256xbf16, #tpu.memory_space<vmem>>, vector<32x256xbf16>
    %cst = arith.constant dense<0.000000e+00> : vector<64x256xf32>
    %2 = tpu.matmul %0, %1, %cst {dimension_numbers = #tpu.dot_dimension_numbers<[1], [0], [0], [1], [0, 0, 1, 1], [], []>} : vector<64x32xbf16>, vector<32x256xbf16>, vector<64x256xf32> -> vector<64x256xf32>
    %c0_3 = arith.constant 0 : index
    %c0_4 = arith.constant 0 : index
    %3 = vector.load %arg2[%c0_3, %c0_4] : memref<1x256xf32, #tpu.memory_space<vmem>>, vector<1x256xf32>
    %4 = vector.broadcast %3 : vector<1x256xf32> to vector<64x256xf32>
    %5 = arith.addf %2, %4 : vector<64x256xf32>
    %c0_5 = arith.constant 0 : index
    %c0_6 = arith.constant 0 : index
    %6 = vector.load %arg3[%c0_5, %c0_6] : memref<64x256xbf16, #tpu.memory_space<vmem>>, vector<64x256xbf16>
    %cst_7 = arith.constant 0.000000e+00 : f32
    %7 = vector.broadcast %cst_7 : f32 to vector<8x64xf32>
    %cst_8 = arith.constant 0.000000e+00 : f32
    %8 = vector.broadcast %cst_8 : f32 to vector<8x64xf32>
    %9 = arith.truncf %7 : vector<8x64xf32> to vector<8x64xbf16>
    %cst_9 = arith.constant dense<0.000000e+00> : vector<8x256xf32>
    %10 = tpu.matmul %9, %6, %cst_9 {dimension_numbers = #tpu.dot_dimension_numbers<[1], [0], [0], [1], [0, 0, 1, 1], [], []>} : vector<8x64xbf16>, vector<64x256xbf16>, vector<8x256xf32> -> vector<8x256xf32>
    %11 = vector.extract_strided_slice %5 {offsets = [0, 0], sizes = [8, 256], strides = [1, 1]} : vector<64x256xf32> to vector<8x256xf32>
    %12 = arith.addf %10, %11 : vector<8x256xf32>
    %13 = arith.negf %12 : vector<8x256xf32>
    %14 = math.exp %13 : vector<8x256xf32>
    %cst_10 = arith.constant 1.000000e+00 : f32
    %15 = vector.broadcast %cst_10 : f32 to vector<8x256xf32>
    %16 = arith.addf %15, %14 : vector<8x256xf32>
    %17 = arith.divf %15, %16 : vector<8x256xf32>
    %18 = vector.extract_strided_slice %17 {offsets = [0, 0], sizes = [8, 64], strides = [1, 1]} : vector<8x256xf32> to vector<8x64xf32>
    %19 = vector.extract_strided_slice %17 {offsets = [0, 64], sizes = [8, 64], strides = [1, 1]} : vector<8x256xf32> to vector<8x64xf32>
    %20 = vector.extract_strided_slice %17 {offsets = [0, 192], sizes = [8, 64], strides = [1, 1]} : vector<8x256xf32> to vector<8x64xf32>
    %21 = vector.extract_strided_slice %12 {offsets = [0, 128], sizes = [8, 64], strides = [1, 1]} : vector<8x256xf32> to vector<8x64xf32>
    %22 = math.tanh %21 : vector<8x64xf32>
    %23 = arith.mulf %19, %8 : vector<8x64xf32>
    %24 = arith.mulf %18, %22 : vector<8x64xf32>
    %25 = arith.addf %23, %24 : vector<8x64xf32>
    %26 = math.tanh %25 : vector<8x64xf32>
    %27 = arith.mulf %20, %26 : vector<8x64xf32>
    %28 = arith.truncf %27 : vector<8x64xf32> to vector<8x64xbf16>
    %cst_11 = arith.constant dense<0.000000e+00> : vector<8x256xf32>
    %29 = tpu.matmul %28, %6, %cst_11 {dimension_numbers = #tpu.dot_dimension_numbers<[1], [0], [0], [1], [0, 0, 1, 1], [], []>} : vector<8x64xbf16>, vector<64x256xbf16>, vector<8x256xf32> -> vector<8x256xf32>
    %30 = vector.extract_strided_slice %5 {offsets = [8, 0], sizes = [8, 256], strides = [1, 1]} : vector<64x256xf32> to vector<8x256xf32>
    %31 = arith.addf %29, %30 : vector<8x256xf32>
    %32 = arith.negf %31 : vector<8x256xf32>
    %33 = math.exp %32 : vector<8x256xf32>
    %cst_12 = arith.constant 1.000000e+00 : f32
    %34 = vector.broadcast %cst_12 : f32 to vector<8x256xf32>
    %35 = arith.addf %34, %33 : vector<8x256xf32>
    %36 = arith.divf %34, %35 : vector<8x256xf32>
    %37 = vector.extract_strided_slice %36 {offsets = [0, 0], sizes = [8, 64], strides = [1, 1]} : vector<8x256xf32> to vector<8x64xf32>
    %38 = vector.extract_strided_slice %36 {offsets = [0, 64], sizes = [8, 64], strides = [1, 1]} : vector<8x256xf32> to vector<8x64xf32>
    %39 = vector.extract_strided_slice %36 {offsets = [0, 192], sizes = [8, 64], strides = [1, 1]} : vector<8x256xf32> to vector<8x64xf32>
    %40 = vector.extract_strided_slice %31 {offsets = [0, 128], sizes = [8, 64], strides = [1, 1]} : vector<8x256xf32> to vector<8x64xf32>
    %41 = math.tanh %40 : vector<8x64xf32>
    %42 = arith.mulf %38, %25 : vector<8x64xf32>
    %43 = arith.mulf %37, %41 : vector<8x64xf32>
    %44 = arith.addf %42, %43 : vector<8x64xf32>
    %45 = math.tanh %44 : vector<8x64xf32>
    %46 = arith.mulf %39, %45 : vector<8x64xf32>
    %47 = arith.truncf %46 : vector<8x64xf32> to vector<8x64xbf16>
    %cst_13 = arith.constant dense<0.000000e+00> : vector<8x256xf32>
    %48 = tpu.matmul %47, %6, %cst_13 {dimension_numbers = #tpu.dot_dimension_numbers<[1], [0], [0], [1], [0, 0, 1, 1], [], []>} : vector<8x64xbf16>, vector<64x256xbf16>, vector<8x256xf32> -> vector<8x256xf32>
    %49 = vector.extract_strided_slice %5 {offsets = [16, 0], sizes = [8, 256], strides = [1, 1]} : vector<64x256xf32> to vector<8x256xf32>
    %50 = arith.addf %48, %49 : vector<8x256xf32>
    %51 = arith.negf %50 : vector<8x256xf32>
    %52 = math.exp %51 : vector<8x256xf32>
    %cst_14 = arith.constant 1.000000e+00 : f32
    %53 = vector.broadcast %cst_14 : f32 to vector<8x256xf32>
    %54 = arith.addf %53, %52 : vector<8x256xf32>
    %55 = arith.divf %53, %54 : vector<8x256xf32>
    %56 = vector.extract_strided_slice %55 {offsets = [0, 0], sizes = [8, 64], strides = [1, 1]} : vector<8x256xf32> to vector<8x64xf32>
    %57 = vector.extract_strided_slice %55 {offsets = [0, 64], sizes = [8, 64], strides = [1, 1]} : vector<8x256xf32> to vector<8x64xf32>
    %58 = vector.extract_strided_slice %55 {offsets = [0, 192], sizes = [8, 64], strides = [1, 1]} : vector<8x256xf32> to vector<8x64xf32>
    %59 = vector.extract_strided_slice %50 {offsets = [0, 128], sizes = [8, 64], strides = [1, 1]} : vector<8x256xf32> to vector<8x64xf32>
    %60 = math.tanh %59 : vector<8x64xf32>
    %61 = arith.mulf %57, %44 : vector<8x64xf32>
    %62 = arith.mulf %56, %60 : vector<8x64xf32>
    %63 = arith.addf %61, %62 : vector<8x64xf32>
    %64 = math.tanh %63 : vector<8x64xf32>
    %65 = arith.mulf %58, %64 : vector<8x64xf32>
    %66 = arith.truncf %65 : vector<8x64xf32> to vector<8x64xbf16>
    %cst_15 = arith.constant dense<0.000000e+00> : vector<8x256xf32>
    %67 = tpu.matmul %66, %6, %cst_15 {dimension_numbers = #tpu.dot_dimension_numbers<[1], [0], [0], [1], [0, 0, 1, 1], [], []>} : vector<8x64xbf16>, vector<64x256xbf16>, vector<8x256xf32> -> vector<8x256xf32>
    %68 = vector.extract_strided_slice %5 {offsets = [24, 0], sizes = [8, 256], strides = [1, 1]} : vector<64x256xf32> to vector<8x256xf32>
    %69 = arith.addf %67, %68 : vector<8x256xf32>
    %70 = arith.negf %69 : vector<8x256xf32>
    %71 = math.exp %70 : vector<8x256xf32>
    %cst_16 = arith.constant 1.000000e+00 : f32
    %72 = vector.broadcast %cst_16 : f32 to vector<8x256xf32>
    %73 = arith.addf %72, %71 : vector<8x256xf32>
    %74 = arith.divf %72, %73 : vector<8x256xf32>
    %75 = vector.extract_strided_slice %74 {offsets = [0, 0], sizes = [8, 64], strides = [1, 1]} : vector<8x256xf32> to vector<8x64xf32>
    %76 = vector.extract_strided_slice %74 {offsets = [0, 64], sizes = [8, 64], strides = [1, 1]} : vector<8x256xf32> to vector<8x64xf32>
    %77 = vector.extract_strided_slice %74 {offsets = [0, 192], sizes = [8, 64], strides = [1, 1]} : vector<8x256xf32> to vector<8x64xf32>
    %78 = vector.extract_strided_slice %69 {offsets = [0, 128], sizes = [8, 64], strides = [1, 1]} : vector<8x256xf32> to vector<8x64xf32>
    %79 = math.tanh %78 : vector<8x64xf32>
    %80 = arith.mulf %76, %63 : vector<8x64xf32>
    %81 = arith.mulf %75, %79 : vector<8x64xf32>
    %82 = arith.addf %80, %81 : vector<8x64xf32>
    %83 = math.tanh %82 : vector<8x64xf32>
    %84 = arith.mulf %77, %83 : vector<8x64xf32>
    %85 = arith.truncf %84 : vector<8x64xf32> to vector<8x64xbf16>
    %cst_17 = arith.constant dense<0.000000e+00> : vector<8x256xf32>
    %86 = tpu.matmul %85, %6, %cst_17 {dimension_numbers = #tpu.dot_dimension_numbers<[1], [0], [0], [1], [0, 0, 1, 1], [], []>} : vector<8x64xbf16>, vector<64x256xbf16>, vector<8x256xf32> -> vector<8x256xf32>
    %87 = vector.extract_strided_slice %5 {offsets = [32, 0], sizes = [8, 256], strides = [1, 1]} : vector<64x256xf32> to vector<8x256xf32>
    %88 = arith.addf %86, %87 : vector<8x256xf32>
    %89 = arith.negf %88 : vector<8x256xf32>
    %90 = math.exp %89 : vector<8x256xf32>
    %cst_18 = arith.constant 1.000000e+00 : f32
    %91 = vector.broadcast %cst_18 : f32 to vector<8x256xf32>
    %92 = arith.addf %91, %90 : vector<8x256xf32>
    %93 = arith.divf %91, %92 : vector<8x256xf32>
    %94 = vector.extract_strided_slice %93 {offsets = [0, 0], sizes = [8, 64], strides = [1, 1]} : vector<8x256xf32> to vector<8x64xf32>
    %95 = vector.extract_strided_slice %93 {offsets = [0, 64], sizes = [8, 64], strides = [1, 1]} : vector<8x256xf32> to vector<8x64xf32>
    %96 = vector.extract_strided_slice %93 {offsets = [0, 192], sizes = [8, 64], strides = [1, 1]} : vector<8x256xf32> to vector<8x64xf32>
    %97 = vector.extract_strided_slice %88 {offsets = [0, 128], sizes = [8, 64], strides = [1, 1]} : vector<8x256xf32> to vector<8x64xf32>
    %98 = math.tanh %97 : vector<8x64xf32>
    %99 = arith.mulf %95, %82 : vector<8x64xf32>
    %100 = arith.mulf %94, %98 : vector<8x64xf32>
    %101 = arith.addf %99, %100 : vector<8x64xf32>
    %102 = math.tanh %101 : vector<8x64xf32>
    %103 = arith.mulf %96, %102 : vector<8x64xf32>
    %104 = arith.truncf %103 : vector<8x64xf32> to vector<8x64xbf16>
    %cst_19 = arith.constant dense<0.000000e+00> : vector<8x256xf32>
    %105 = tpu.matmul %104, %6, %cst_19 {dimension_numbers = #tpu.dot_dimension_numbers<[1], [0], [0], [1], [0, 0, 1, 1], [], []>} : vector<8x64xbf16>, vector<64x256xbf16>, vector<8x256xf32> -> vector<8x256xf32>
    %106 = vector.extract_strided_slice %5 {offsets = [40, 0], sizes = [8, 256], strides = [1, 1]} : vector<64x256xf32> to vector<8x256xf32>
    %107 = arith.addf %105, %106 : vector<8x256xf32>
    %108 = arith.negf %107 : vector<8x256xf32>
    %109 = math.exp %108 : vector<8x256xf32>
    %cst_20 = arith.constant 1.000000e+00 : f32
    %110 = vector.broadcast %cst_20 : f32 to vector<8x256xf32>
    %111 = arith.addf %110, %109 : vector<8x256xf32>
    %112 = arith.divf %110, %111 : vector<8x256xf32>
    %113 = vector.extract_strided_slice %112 {offsets = [0, 0], sizes = [8, 64], strides = [1, 1]} : vector<8x256xf32> to vector<8x64xf32>
    %114 = vector.extract_strided_slice %112 {offsets = [0, 64], sizes = [8, 64], strides = [1, 1]} : vector<8x256xf32> to vector<8x64xf32>
    %115 = vector.extract_strided_slice %112 {offsets = [0, 192], sizes = [8, 64], strides = [1, 1]} : vector<8x256xf32> to vector<8x64xf32>
    %116 = vector.extract_strided_slice %107 {offsets = [0, 128], sizes = [8, 64], strides = [1, 1]} : vector<8x256xf32> to vector<8x64xf32>
    %117 = math.tanh %116 : vector<8x64xf32>
    %118 = arith.mulf %114, %101 : vector<8x64xf32>
    %119 = arith.mulf %113, %117 : vector<8x64xf32>
    %120 = arith.addf %118, %119 : vector<8x64xf32>
    %121 = math.tanh %120 : vector<8x64xf32>
    %122 = arith.mulf %115, %121 : vector<8x64xf32>
    %123 = arith.truncf %122 : vector<8x64xf32> to vector<8x64xbf16>
    %cst_21 = arith.constant dense<0.000000e+00> : vector<8x256xf32>
    %124 = tpu.matmul %123, %6, %cst_21 {dimension_numbers = #tpu.dot_dimension_numbers<[1], [0], [0], [1], [0, 0, 1, 1], [], []>} : vector<8x64xbf16>, vector<64x256xbf16>, vector<8x256xf32> -> vector<8x256xf32>
    %125 = vector.extract_strided_slice %5 {offsets = [48, 0], sizes = [8, 256], strides = [1, 1]} : vector<64x256xf32> to vector<8x256xf32>
    %126 = arith.addf %124, %125 : vector<8x256xf32>
    %127 = arith.negf %126 : vector<8x256xf32>
    %128 = math.exp %127 : vector<8x256xf32>
    %cst_22 = arith.constant 1.000000e+00 : f32
    %129 = vector.broadcast %cst_22 : f32 to vector<8x256xf32>
    %130 = arith.addf %129, %128 : vector<8x256xf32>
    %131 = arith.divf %129, %130 : vector<8x256xf32>
    %132 = vector.extract_strided_slice %131 {offsets = [0, 0], sizes = [8, 64], strides = [1, 1]} : vector<8x256xf32> to vector<8x64xf32>
    %133 = vector.extract_strided_slice %131 {offsets = [0, 64], sizes = [8, 64], strides = [1, 1]} : vector<8x256xf32> to vector<8x64xf32>
    %134 = vector.extract_strided_slice %131 {offsets = [0, 192], sizes = [8, 64], strides = [1, 1]} : vector<8x256xf32> to vector<8x64xf32>
    %135 = vector.extract_strided_slice %126 {offsets = [0, 128], sizes = [8, 64], strides = [1, 1]} : vector<8x256xf32> to vector<8x64xf32>
    %136 = math.tanh %135 : vector<8x64xf32>
    %137 = arith.mulf %133, %120 : vector<8x64xf32>
    %138 = arith.mulf %132, %136 : vector<8x64xf32>
    %139 = arith.addf %137, %138 : vector<8x64xf32>
    %140 = math.tanh %139 : vector<8x64xf32>
    %141 = arith.mulf %134, %140 : vector<8x64xf32>
    %142 = arith.truncf %141 : vector<8x64xf32> to vector<8x64xbf16>
    %cst_23 = arith.constant dense<0.000000e+00> : vector<8x256xf32>
    %143 = tpu.matmul %142, %6, %cst_23 {dimension_numbers = #tpu.dot_dimension_numbers<[1], [0], [0], [1], [0, 0, 1, 1], [], []>} : vector<8x64xbf16>, vector<64x256xbf16>, vector<8x256xf32> -> vector<8x256xf32>
    %144 = vector.extract_strided_slice %5 {offsets = [56, 0], sizes = [8, 256], strides = [1, 1]} : vector<64x256xf32> to vector<8x256xf32>
    %145 = arith.addf %143, %144 : vector<8x256xf32>
    %146 = arith.negf %145 : vector<8x256xf32>
    %147 = math.exp %146 : vector<8x256xf32>
    %cst_24 = arith.constant 1.000000e+00 : f32
    %148 = vector.broadcast %cst_24 : f32 to vector<8x256xf32>
    %149 = arith.addf %148, %147 : vector<8x256xf32>
    %150 = arith.divf %148, %149 : vector<8x256xf32>
    %151 = vector.extract_strided_slice %150 {offsets = [0, 0], sizes = [8, 64], strides = [1, 1]} : vector<8x256xf32> to vector<8x64xf32>
    %152 = vector.extract_strided_slice %150 {offsets = [0, 64], sizes = [8, 64], strides = [1, 1]} : vector<8x256xf32> to vector<8x64xf32>
    %153 = vector.extract_strided_slice %150 {offsets = [0, 192], sizes = [8, 64], strides = [1, 1]} : vector<8x256xf32> to vector<8x64xf32>
    %154 = vector.extract_strided_slice %145 {offsets = [0, 128], sizes = [8, 64], strides = [1, 1]} : vector<8x256xf32> to vector<8x64xf32>
    %155 = math.tanh %154 : vector<8x64xf32>
    %156 = arith.mulf %152, %139 : vector<8x64xf32>
    %157 = arith.mulf %151, %155 : vector<8x64xf32>
    %158 = arith.addf %156, %157 : vector<8x64xf32>
    %159 = math.tanh %158 : vector<8x64xf32>
    %160 = arith.mulf %153, %159 : vector<8x64xf32>
    %161 = arith.mulf %160, %160 : vector<8x64xf32>
    %cst_25 = arith.constant dense<0.000000e+00> : vector<8xf32>
    %162 = vector.multi_reduction <add>, %161, %cst_25 [1] : vector<8x64xf32> to vector<8xf32>
    %163 = vector.shape_cast %162 : vector<8xf32> to vector<8x1xf32>
    %cst_26 = arith.constant 1.000000e-24 : f32
    %164 = vector.broadcast %cst_26 : f32 to vector<8x1xf32>
    %165 = arith.maximumf %163, %164 : vector<8x1xf32>
    %166 = math.rsqrt %165 : vector<8x1xf32>
    %167 = vector.broadcast %166 : vector<8x1xf32> to vector<8x64xf32>
    %168 = arith.mulf %160, %167 : vector<8x64xf32>
    %c0_27 = arith.constant 0 : index
    %c0_28 = arith.constant 0 : index
    %169 = vector.load %arg4[%c0_27, %c0_28] : memref<8x64xf32, #tpu.memory_space<vmem>>, vector<8x64xf32>
    tpu.vector_store %arg4[%c0_27, %c0_28], %168 {strides = array<i32>} : memref<8x64xf32, #tpu.memory_space<vmem>>, vector<8x64xf32>,
    return
  }
}

</mosaic_0001>

<bundles_post_ra>
// kernel: tpu_custom_call.1
= control target key start
LH: loop header
LB: loop body
LE: loop exit
PB: predicated region body
PF: predicated region fallthrough
CT: control target
= control target key end

     0   :  { %9 = vsyncpa [#allocation3], 0  ;;  %s1263_s0 = inlined_call_operand.vmem [shape: bf16[64,32], index: 0, kind: input, shape index: {}]   ;;  %s1264_s1 = inlined_call_operand.vmem [shape: bf16[32,256], index: 1, kind: input, shape index: {}]   ;;  %s1265_s2 = inlined_call_operand.vmem [shape: f32[1,256], index: 2, kind: input, shape index: {}]   ;;  %s1266_s3 = inlined_call_operand.hbm [shape: bf16[64,256], index: 3, kind: input, shape index: {}]   ;;  %s1267_s4 = inlined_call_operand.hbm [shape: f32[8,64], index: 4, kind: output, shape index: {}]  }
   0x1   :  { %10 = vsyncpa [#allocation4], 0  ;;  %s1032_s15 = smov [#allocation2]  }
   0x2   :  { %s22_s16 = sshll.u32 %s1032_s15, 4  ;;  %s23_s16 = int_to_ptr.vmem [resolvable:$true] %s22_s16 }
   0x3   :  { %s996_s17 = scalar_lea.vmem %s23_s16, 1024  ;;  %p1001_p1 = scmp.lt.s32.totalorder %s23_s16, %s23_s16 }
   0x4   :  { %p997_p0 = scmp.ne.s32.totalorder %s23_s16, %s996_s17  ;;  %p1002_p2 = scmp.lt.s32.totalorder %s996_s17, %s996_s17 }
   0x6   :  { %p1003_p3 = por %p1002_p2, %p1001_p1 }
   0x8   :  { %p1004_p4 = pnand %p1003_p3, %p997_p0 }
   0xa   :  { %1007 = shalt.err (!%p1004_p4)
}
   0xb   :  { %s1033_s18 = smov 128   ;;  %s1034_s19 = smov 8  }
   0xc   :  { %28 = dma.hbm_to_vmem [thread:$0]  %s1266_s3, 1024, %s23_s16, [#allocation3], %s1033_s18, %s1033_s18, %s1034_s19  }
   0xd   :  { %1028 = dma.done.wait [#allocation3], 1024  }
   0xe   :  { %1029 = vsyncadd [#allocation3], 4294966272  ;;  %v1035_v0 = vmov 0   ;;  %v868_v1 = vld [vmem:[%s1264_s1 + $0x14] ss:$8 sps:$4 sm:$0xff]   ;;  %v880_v9 = vld [vmem:[%s1263_s0] sm:$0xff]   ;;  %v47_v14 = vlaneseq }
   0xf   :  { %142 = vmatprep.mubr.bf16.mxu0 %v1035_v0  ;;  %267 = vmatprep.mubr.bf16.mxu1 %v1035_v0  ;;  %v1071_v2 = vld [vmem:[#allocation2 + $0x34] ss:$8 sps:$4 sm:$0xff]   ;;  %v872_v3 = vld [vmem:[%s1264_s1 + $0x10] ss:$8 sps:$4 sm:$0xff]   ;;  %v874_v5 = vld [vmem:[%s1264_s1 + $0x4] ss:$8 sps:$4 sm:$0xff]  }
  0x10   :  { %122 = vmatprep.subr.bf16.mxu0 %v868_v1  ;;  %v1076_v4 = vld [vmem:[#allocation2 + $0x30] ss:$8 sps:$4 sm:$0xff]   ;;  %243 = vmatprep.subr.bf16.mxu1 %v1071_v2  ;;  %v1083_v6 = vld [vmem:[#allocation2 + $0x24] ss:$8 sps:$4 sm:$0xff]   ;;  %v878_v7 = vld [vmem:[%s1264_s1] ss:$8 sps:$4 sm:$0xff]  }
  0x11   :  { %123 = vmatpush1.bf16.msra.mxu0 %v872_v3  ;;  %244 = vmatpush1.bf16.msra.mxu1 %v1076_v4  ;;  %v1088_v8 = vld [vmem:[#allocation2 + $0x20] ss:$8 sps:$4 sm:$0xff]   ;;  %v1094_v10 = vld [vmem:[#allocation2 + $0x14] ss:$8 sps:$4 sm:$0xff]   ;;  %vm97_vm0 = vcmask 261120   ;;  %v48_v15 = vshrl.u32 %v47_v14, 7 }
  0x12   :  { %124 = vmatprep.subr.bf16.mxu0 %v874_v5  ;;  %245 = vmatprep.subr.bf16.mxu1 %v1083_v6  ;;  %v1097_v11 = vld [vmem:[#allocation2 + $0x10] ss:$8 sps:$4 sm:$0xff]   ;;  %v1100_v12 = vld [vmem:[#allocation2 + $0x4] ss:$8 sps:$4 sm:$0xff]   ;;  %v1105_v13 = vld [vmem:[#allocation2] ss:$8 sps:$4 sm:$0xff]  }
  0x13   :  { %v49_v16 = vsub.s32 0, %v48_v15  ;;  %v45_v17 = vld [vmem:[%s1265_s2] sm:$0x3]  ;;  %v53_v26 = vsub.s32 1, %v48_v15  ;;  %s1036_s2 = smov 64   ;;  %vm231_vm1 = vcmask 523264  }
  0x14   :  { %v887_v1 = vld [vmem:[%s1263_s0 + $0x8] sm:$0xff]   ;;  %v888_v3 = vld [vmem:[%s1263_s0 + $0x10] sm:$0xff]   ;;  %v889_v5 = vld [vmem:[%s1263_s0 + $0x18] sm:$0xff]   ;;  %s1037_s0 = smov [#allocation5]  }
  0x15   :  { %125 = vmatpush1.bf16.msra.mxu0 %v878_v7  ;;  %246 = vmatpush1.bf16.msra.mxu1 %v1088_v8  ;;  %v1132_v18 = vrot.slane %v45_v17, %v49_v16  ;;  %v1135_v28 = vrot.slane %v45_v17, %v53_v26  ;;  %s810_s12 = sshll.u32 %s1037_s0, 4  ;;  %s811_s12 = int_to_ptr.vmem [resolvable:$true] %s810_s12 }
  0x16   :  { %247 = vmatprep.subr.bf16.mxu1 %v1094_v10  ;;  %383 = vmatprep.subr.bf16.mxu0 %v1071_v2  ;;  %s1008_s13 = scalar_lea.vmem %s811_s12, 128  ;;  %p1013_p6 = scmp.lt.s32.totalorder %s811_s12, %s811_s12 }
  0x17   :  { %p1009_p5 = scmp.ne.s32.totalorder %s811_s12, %s1008_s13  ;;  %p1014_p7 = scmp.lt.s32.totalorder %s1008_s13, %s1008_s13 }
  0x18   :  { %827 = vmatmul.mubr.msk.bf16.vlgmr.msra.gmra.mxu0 %vm97_vm0, %v880_v9 }
  0x19   :  { %248 = vmatpush1.bf16.msra.mxu1 %v1097_v11  ;;  %384 = vmatpush1.bf16.msra.mxu0 %v1076_v4  ;;  %p1015_p8 = por %p1014_p7, %p1013_p6 }
  0x1a   :  { %249 = vmatprep.subr.bf16.mxu1 %v1100_v12  ;;  %152 = vmatprep.mubr.bf16.mxu0 %v1035_v0 }
  0x1b   :  { %385 = vmatprep.subr.bf16.mxu0 %v1083_v6  ;;  %p1016_p9 = pnand %p1015_p8, %p1009_p5 }
  0x1d   :  { %250 = vmatpush1.bf16.msra.mxu1 %v1105_v13  ;;  %386 = vmatpush1.bf16.msra.mxu0 %v1088_v8 }
  0x1e   :  { %313 = vmatprep.subr.bf16.mxu1 %v1071_v2  ;;  %387 = vmatprep.subr.bf16.mxu0 %v1094_v10 }
  0x20   :  { %268 = vmatmul.mubr.bf16.vlgmr.msra.gmra.mxu1 %v1035_v0  ;;  %828 = vmatmul.mubr.msk.bf16.gmra.mxu0 %vm97_vm0, %v887_v1 }
  0x21   :  { %314 = vmatpush1.bf16.msra.mxu1 %v1076_v4  ;;  %337 = vmatprep.mubr.bf16.mxu1 %v1035_v0 }
  0x22   :  { %315 = vmatprep.subr.bf16.mxu1 %v1083_v6  ;;  %388 = vmatpush1.bf16.msra.mxu0 %v1097_v11 }
  0x23   :  { %389 = vmatprep.subr.bf16.mxu0 %v1100_v12  ;;  %162 = vmatprep.mubr.bf16.mxu0 %v1035_v0 }
  0x25   :  { %316 = vmatpush1.bf16.msra.mxu1 %v1088_v8 }
  0x26   :  { %317 = vmatprep.subr.bf16.mxu1 %v1094_v10  ;;  %390 = vmatpush1.bf16.msra.mxu0 %v1105_v13 }
  0x27   :  { %523 = vmatprep.subr.bf16.mxu0 %v1071_v2 }
  0x28   :  { %829 = vmatmul.mubr.msk.bf16.gmra.mxu0 %vm97_vm0, %v888_v3 }
  0x29   :  { %318 = vmatpush1.bf16.msra.mxu1 %v1097_v11  ;;  %172 = vmatprep.mubr.bf16.mxu0 %v1035_v0 }
  0x2a   :  { %319 = vmatprep.subr.bf16.mxu1 %v1100_v12 }
  0x2d   :  { %320 = vmatpush1.bf16.msra.mxu1 %v1105_v13 }
  0x2e   :  { %453 = vmatprep.subr.bf16.mxu1 %v1071_v2 }
  0x30   :  { %830 = vmatmul.mubr.msk.bf16.gmra.mxu0 %vm97_vm0, %v889_v5 }
  0x31   :  { %407 = vmatprep.mubr.bf16.mxu0 %v1035_v0 }
  0xd8   :  { %v144_v19 = vpop.f32.mrf.mxu0 }
  0xd9   :  { %v145_v20 = vadd.f32 %v144_v19, %v1132_v18 }
  0xda   :  { %v146_v29 = vpop.f32.mrf.mxu0 }
  0xdb   :  { %v147_v30 = vadd.f32 %v146_v29, %v1135_v28 }
  0xdc   :  { %v148_v48 = vpop.f32.mrf.mxu0 }
  0xdd   :  { %v149_v49 = vadd.f32 %v148_v48, %v1132_v18 }
  0xde   :  { %v150_v56 = vpop.f32.mrf.mxu0 }
  0xdf   :  { %v151_v57 = vadd.f32 %v150_v56, %v1135_v28 }
  0xe0   :  { %v269_v21 = vpop.f32.mrf.mxu1 }
  0xe1   :  { %v270_v22 = vadd.f32 %v269_v21, %v145_v20 }
  0xe2   :  { %v271_v23 = vpop.f32.mrf.mxu1 }
  0xe3   :  { %v839_v24 = vmul.f32 -1.442695, %v270_v22  ;;  %v272_v31 = vadd.f32 %v271_v23, %v147_v30 }
  0xe4   :  { %v273_v25 = vpop.f32.mrf.mxu1 }
  0xe5   :  { %890 = vpow2.f32 %v839_v24  ;;  %v840_v37 = vmul.f32 -1.442695, %v272_v31  ;;  %v154_v24 = vpop.f32.mrf.mxu0 }
  0xe6   :  { %v274_v27 = vpop.f32.mrf.mxu1  ;;  %892 = vtanh.f32 %v272_v31 }
  0xe7   :  { %v156_v25 = vpop.f32.mrf.mxu0 }
  0xe9   :  { %v158_v26 = vpop.f32.mrf.mxu0 }
  0xeb   :  { %v160_v27 = vpop.f32.mrf.mxu0 }
  0xed   :  { %v1179_v29 = vpop.f32.mrf.mxu0 }
  0xef   :  { %v1181_v30 = vpop.f32.mrf.mxu0 }
  0xf1   :  { %v1183_v31 = vpop.f32.mrf.mxu0 }
  0xf2   :  { %v891_v32 = vpop.eup %890 }
  0xf3   :  { %v282_v33 = vadd.f32 1.0, %v891_v32  ;;  %v893_v34 = vpop.eup %892  ;;  %v1185_v32 = vpop.f32.mrf.mxu0 }
  0xf5   :  { %894 = vrcp.f32 %v282_v33  ;;  %v1187_v33 = vpop.f32.mrf.mxu0 }
  0xf6   :  { %896 = vpow2.f32 %v840_v37  ;;  %v155_v37 = vadd.f32 %v154_v24, %v1132_v18 }
 0x102   :  { %v895_v35 = vpop.eup %894 }
 0x103   :  { %v290_v36 = vmul.f32 %v895_v35, %v893_v34  ;;  %v897_v38 = vpop.eup %896  ;;  %v289_v40 = vmul.f32 0.0, %v895_v35  ;;  %v1189_v34 = vpop.f32.mrf.mxu0 }
 0x104   :  { %v283_v39 = vadd.f32 1.0, %v897_v38 }
 0x105   :  { %292 = vrot.lane.b32.xlu0 %v290_v36, %s1036_s2  ;;  %v1191_v35 = vpop.f32.mrf.mxu0 }
 0x106   :  { %898 = vrcp.f32 %v283_v39 }
 0x107   :  { %v1193_v36 = vpop.f32.mrf.mxu0 }
 0x113   :  { %v899_v43 = vpop.eup %898 }
 0x177   :  { %v293_v41 = vpop.permute.xlu0 %292 }
 0x178   :  { %v295_v42 = vadd.f32 %v293_v41, %v289_v40 }
 0x17a   :  { %900 = vtanh.f32 %v295_v42 }
 0x187   :  { %v901_v44 = vpop.eup %900 }
 0x188   :  { %v297_v45 = vmul.f32 %v901_v44, %v899_v43  ;;  %v157_v44 = vadd.f32 %v156_v25, %v1135_v28 }
 0x18a   :  { %v298_v46 = vpack.c.bf16 %v297_v45, %v297_v45 }
 0x18c   :  { %300 = vrot.lane.b32.xlu0 %v298_v46, %s1036_s2 }
 0x1fe   :  { %v301_v47 = vpop.permute.xlu0 %300 }
 0x1ff   :  { %841 = vmatmul.mubr.msk.bf16.vlgmr.msra.gmra.mxu1 %vm231_vm1, %v301_v47 }
 0x200   :  { %454 = vmatpush1.bf16.msra.mxu1 %v1076_v4  ;;  %477 = vmatprep.mubr.bf16.mxu1 %v1035_v0 }
 0x201   :  { %455 = vmatprep.subr.bf16.mxu1 %v1083_v6 }
 0x204   :  { %456 = vmatpush1.bf16.msra.mxu1 %v1088_v8 }
 0x205   :  { %457 = vmatprep.subr.bf16.mxu1 %v1094_v10 }
 0x208   :  { %458 = vmatpush1.bf16.msra.mxu1 %v1097_v11 }
 0x209   :  { %459 = vmatprep.subr.bf16.mxu1 %v1100_v12 }
 0x20c   :  { %460 = vmatpush1.bf16.msra.mxu1 %v1105_v13 }
 0x20d   :  { %593 = vmatprep.subr.bf16.mxu1 %v1071_v2 }
 0x2bf   :  { %v339_v50 = vpop.f32.mrf.mxu1 }
 0x2c0   :  { %v340_v51 = vadd.f32 %v339_v50, %v149_v49 }
 0x2c1   :  { %v341_v52 = vpop.f32.mrf.mxu1 }
 0x2c2   :  { %v842_v53 = vmul.f32 -1.442695, %v340_v51  ;;  %v342_v58 = vadd.f32 %v341_v52, %v151_v57 }
 0x2c3   :  { %v343_v54 = vpop.f32.mrf.mxu1 }
 0x2c4   :  { %902 = vpow2.f32 %v842_v53  ;;  %v843_v7 = vmul.f32 -1.442695, %v342_v58 }
 0x2c5   :  { %v344_v55 = vpop.f32.mrf.mxu1  ;;  %904 = vtanh.f32 %v342_v58 }
 0x2d1   :  { %v903_v59 = vpop.eup %902 }
 0x2d2   :  { %v352_v60 = vadd.f32 1.0, %v903_v59  ;;  %v905_v61 = vpop.eup %904 }
 0x2d4   :  { %906 = vrcp.f32 %v352_v60 }
 0x2d5   :  { %908 = vpow2.f32 %v843_v7 }
 0x2e1   :  { %v907_v62 = vpop.eup %906 }
 0x2e2   :  { %v360_v63 = vmul.f32 %v907_v62, %v905_v61  ;;  %v909_v9 = vpop.eup %908  ;;  %v359_v15 = vmul.f32 %v907_v62, %v295_v42  ;;  %v159_v62 = vadd.f32 %v158_v26, %v1132_v18 }
 0x2e3   :  { %v353_v14 = vadd.f32 1.0, %v909_v9 }
 0x2e4   :  { %362 = vrot.lane.b32.xlu1 %v360_v63, %s1036_s2 }
 0x2e5   :  { %910 = vrcp.f32 %v353_v14  ;;  %v161_v14 = vadd.f32 %v160_v27, %v1135_v28 }
 0x2f2   :  { %v911_v19 = vpop.eup %910 }
 0x356   :  { %v363_v16 = vpop.permute.xlu1 %362 }
 0x357   :  { %v365_v17 = vadd.f32 %v363_v16, %v359_v15 }
 0x359   :  { %912 = vtanh.f32 %v365_v17 }
 0x366   :  { %v913_v20 = vpop.eup %912 }
 0x367   :  { %v367_v21 = vmul.f32 %v913_v20, %v911_v19 }
 0x369   :  { %v368_v22 = vpack.c.bf16 %v367_v21, %v367_v21 }
 0x36b   :  { %370 = vrot.lane.b32.xlu1 %v368_v22, %s1036_s2 }
 0x3dd   :  { %v371_v23 = vpop.permute.xlu1 %370 }
 0x3de   :  { %844 = vmatmul.mubr.msk.bf16.vlgmr.msra.gmra.mxu0 %vm231_vm1, %v371_v23 }
 0x3df   :  { %524 = vmatpush1.bf16.msra.mxu0 %v1076_v4  ;;  %547 = vmatprep.mubr.bf16.mxu0 %v1035_v0 }
 0x3e0   :  { %525 = vmatprep.subr.bf16.mxu0 %v1083_v6 }
 0x3e3   :  { %526 = vmatpush1.bf16.msra.mxu0 %v1088_v8 }
 0x3e4   :  { %527 = vmatprep.subr.bf16.mxu0 %v1094_v10 }
 0x3e7   :  { %528 = vmatpush1.bf16.msra.mxu0 %v1097_v11 }
 0x3e8   :  { %529 = vmatprep.subr.bf16.mxu0 %v1100_v12 }
 0x3eb   :  { %530 = vmatpush1.bf16.msra.mxu0 %v1105_v13 }
 0x3ec   :  { %663 = vmatprep.subr.bf16.mxu0 %v1071_v2 }
 0x49e   :  { %v409_v38 = vpop.f32.mrf.mxu0 }
 0x49f   :  { %v410_v39 = vadd.f32 %v409_v38, %v155_v37 }
 0x4a0   :  { %v411_v40 = vpop.f32.mrf.mxu0 }
 0x4a1   :  { %v845_v41 = vmul.f32 -1.442695, %v410_v39  ;;  %v412_v45 = vadd.f32 %v411_v40, %v157_v44 }
 0x4a2   :  { %v413_v42 = vpop.f32.mrf.mxu0 }
 0x4a3   :  { %914 = vpow2.f32 %v845_v41  ;;  %v846_v51 = vmul.f32 -1.442695, %v412_v45  ;;  %v165_v41 = vadd.f32 %v1179_v29, %v1132_v18 }
 0x4a4   :  { %v414_v43 = vpop.f32.mrf.mxu0  ;;  %916 = vtanh.f32 %v412_v45 }
 0x4b0   :  { %v915_v46 = vpop.eup %914 }
 0x4b1   :  { %v422_v47 = vadd.f32 1.0, %v915_v46  ;;  %v917_v48 = vpop.eup %916 }
 0x4b3   :  { %918 = vrcp.f32 %v422_v47 }
 0x4b4   :  { %920 = vpow2.f32 %v846_v51 }
 0x4c0   :  { %v919_v49 = vpop.eup %918 }
 0x4c1   :  { %v430_v50 = vmul.f32 %v919_v49, %v917_v48  ;;  %v921_v52 = vpop.eup %920  ;;  %v429_v54 = vmul.f32 %v919_v49, %v365_v17  ;;  %v167_v48 = vadd.f32 %v1181_v30, %v1135_v28 }
 0x4c2   :  { %v423_v53 = vadd.f32 1.0, %v921_v52 }
 0x4c3   :  { %432 = vrot.lane.b32.xlu0 %v430_v50, %s1036_s2 }
 0x4c4   :  { %922 = vrcp.f32 %v423_v53 }
 0x4d1   :  { %v923_v57 = vpop.eup %922 }
 0x535   :  { %v433_v55 = vpop.permute.xlu0 %432 }
 0x536   :  { %v435_v56 = vadd.f32 %v433_v55, %v429_v54 }
 0x538   :  { %924 = vtanh.f32 %v435_v56 }
 0x545   :  { %v925_v58 = vpop.eup %924 }
 0x546   :  { %v437_v59 = vmul.f32 %v925_v58, %v923_v57 }
 0x548   :  { %v438_v60 = vpack.c.bf16 %v437_v59, %v437_v59 }
 0x54a   :  { %440 = vrot.lane.b32.xlu1 %v438_v60, %s1036_s2 }
 0x5bc   :  { %v441_v61 = vpop.permute.xlu1 %440 }
 0x5bd   :  { %847 = vmatmul.mubr.msk.bf16.vlgmr.msra.gmra.mxu1 %vm231_vm1, %v441_v61 }
 0x5be   :  { %594 = vmatpush1.bf16.msra.mxu1 %v1076_v4  ;;  %617 = vmatprep.mubr.bf16.mxu1 %v1035_v0 }
 0x5bf   :  { %595 = vmatprep.subr.bf16.mxu1 %v1083_v6 }
 0x5c2   :  { %596 = vmatpush1.bf16.msra.mxu1 %v1088_v8 }
 0x5c3   :  { %597 = vmatprep.subr.bf16.mxu1 %v1094_v10 }
 0x5c6   :  { %598 = vmatpush1.bf16.msra.mxu1 %v1097_v11 }
 0x5c7   :  { %599 = vmatprep.subr.bf16.mxu1 %v1100_v12 }
 0x5ca   :  { %600 = vmatpush1.bf16.msra.mxu1 %v1105_v13 }
 0x5cb   :  { %733 = vmatprep.subr.bf16.mxu1 %v1071_v2 }
 0x67d   :  { %v479_v63 = vpop.f32.mrf.mxu1 }
 0x67e   :  { %v480_v1 = vadd.f32 %v479_v63, %v159_v62 }
 0x67f   :  { %v481_v3 = vpop.f32.mrf.mxu1 }
 0x680   :  { %v848_v5 = vmul.f32 -1.442695, %v480_v1  ;;  %v482_v15 = vadd.f32 %v481_v3, %v161_v14  ;;  %v169_v1 = vadd.f32 %v1183_v31, %v1132_v18 }
 0x681   :  { %v483_v7 = vpop.f32.mrf.mxu1 }
 0x682   :  { %926 = vpow2.f32 %v848_v5  ;;  %v849_v2 = vmul.f32 -1.442695, %v482_v15 }
 0x683   :  { %v484_v9 = vpop.f32.mrf.mxu1  ;;  %928 = vtanh.f32 %v482_v15 }
 0x68f   :  { %v927_v16 = vpop.eup %926 }
 0x690   :  { %v492_v17 = vadd.f32 1.0, %v927_v16  ;;  %v929_v19 = vpop.eup %928 }
 0x692   :  { %930 = vrcp.f32 %v492_v17 }
 0x693   :  { %932 = vpow2.f32 %v849_v2 }
 0x69f   :  { %v931_v20 = vpop.eup %930 }
 0x6a0   :  { %v500_v21 = vmul.f32 %v931_v20, %v929_v19  ;;  %v933_v22 = vpop.eup %932  ;;  %v499_v24 = vmul.f32 %v931_v20, %v435_v56 }
 0x6a1   :  { %v493_v23 = vadd.f32 1.0, %v933_v22 }
 0x6a2   :  { %502 = vrot.lane.b32.xlu0 %v500_v21, %s1036_s2 }
 0x6a3   :  { %934 = vrcp.f32 %v493_v23 }
 0x6b0   :  { %v935_v27 = vpop.eup %934 }
 0x714   :  { %v503_v25 = vpop.permute.xlu0 %502 }
 0x715   :  { %v505_v26 = vadd.f32 %v503_v25, %v499_v24  ;;  %v175_v24 = vadd.f32 %v1187_v33, %v1132_v18 }
 0x717   :  { %936 = vtanh.f32 %v505_v26 }
 0x724   :  { %v937_v37 = vpop.eup %936 }
 0x725   :  { %v507_v38 = vmul.f32 %v937_v37, %v935_v27 }
 0x727   :  { %v508_v39 = vpack.c.bf16 %v507_v38, %v507_v38 }
 0x729   :  { %510 = vrot.lane.b32.xlu1 %v508_v39, %s1036_s2 }
 0x79b   :  { %v511_v40 = vpop.permute.xlu1 %510 }
 0x79c   :  { %850 = vmatmul.mubr.msk.bf16.vlgmr.msra.gmra.mxu0 %vm231_vm1, %v511_v40  ;;  %v177_v40 = vadd.f32 %v1189_v34, %v1135_v28 }
 0x79d   :  { %664 = vmatpush1.bf16.msra.mxu0 %v1076_v4  ;;  %687 = vmatprep.mubr.bf16.mxu0 %v1035_v0 }
 0x79e   :  { %665 = vmatprep.subr.bf16.mxu0 %v1083_v6 }
 0x7a1   :  { %666 = vmatpush1.bf16.msra.mxu0 %v1088_v8 }
 0x7a2   :  { %667 = vmatprep.subr.bf16.mxu0 %v1094_v10 }
 0x7a5   :  { %668 = vmatpush1.bf16.msra.mxu0 %v1097_v11 }
 0x7a6   :  { %669 = vmatprep.subr.bf16.mxu0 %v1100_v12 }
 0x7a9   :  { %670 = vmatpush1.bf16.msra.mxu0 %v1105_v13 }
 0x85c   :  { %v549_v42 = vpop.f32.mrf.mxu0 }
 0x85d   :  { %v550_v43 = vadd.f32 %v549_v42, %v165_v41 }
 0x85e   :  { %v551_v44 = vpop.f32.mrf.mxu0 }
 0x85f   :  { %v851_v45 = vmul.f32 -1.442695, %v550_v43  ;;  %v552_v49 = vadd.f32 %v551_v44, %v167_v48 }
 0x860   :  { %v553_v46 = vpop.f32.mrf.mxu0 }
 0x861   :  { %938 = vpow2.f32 %v851_v45  ;;  %v852_v29 = vmul.f32 -1.442695, %v552_v49 }
 0x862   :  { %v554_v47 = vpop.f32.mrf.mxu0  ;;  %940 = vtanh.f32 %v552_v49 }
 0x86e   :  { %v939_v50 = vpop.eup %938 }
 0x86f   :  { %v562_v51 = vadd.f32 1.0, %v939_v50  ;;  %v941_v52 = vpop.eup %940 }
 0x871   :  { %942 = vrcp.f32 %v562_v51 }
 0x872   :  { %944 = vpow2.f32 %v852_v29 }
 0x87e   :  { %v943_v53 = vpop.eup %942 }
 0x87f   :  { %v570_v54 = vmul.f32 %v943_v53, %v941_v52  ;;  %v945_v55 = vpop.eup %944  ;;  %v569_v57 = vmul.f32 %v943_v53, %v505_v26 }
 0x880   :  { %v563_v56 = vadd.f32 1.0, %v945_v55  ;;  %v179_v55 = vadd.f32 %v1191_v35, %v1132_v18 }
 0x881   :  { %572 = vrot.lane.b32.xlu0 %v570_v54, %s1036_s2 }
 0x882   :  { %946 = vrcp.f32 %v563_v56 }
 0x88f   :  { %v947_v30 = vpop.eup %946 }
 0x8f3   :  { %v573_v58 = vpop.permute.xlu0 %572 }
 0x8f4   :  { %v575_v59 = vadd.f32 %v573_v58, %v569_v57 }
 0x8f6   :  { %948 = vtanh.f32 %v575_v59 }
 0x903   :  { %v949_v60 = vpop.eup %948 }
 0x904   :  { %v577_v61 = vmul.f32 %v949_v60, %v947_v30 }
 0x906   :  { %v578_v62 = vpack.c.bf16 %v577_v61, %v577_v61  ;;  %v181_v61 = vadd.f32 %v1193_v36, %v1135_v28 }
 0x908   :  { %580 = vrot.lane.b32.xlu1 %v578_v62, %s1036_s2 }
 0x97a   :  { %v581_v63 = vpop.permute.xlu1 %580 }
 0x97b   :  { %853 = vmatmul.mubr.msk.bf16.vlgmr.msra.gmra.mxu1 %vm231_vm1, %v581_v63 }
 0x97c   :  { %734 = vmatpush1.bf16.msra.mxu1 %v1076_v4  ;;  %757 = vmatprep.mubr.bf16.mxu1 %v1035_v0 }
 0x97d   :  { %735 = vmatprep.subr.bf16.mxu1 %v1083_v6 }
 0x980   :  { %736 = vmatpush1.bf16.msra.mxu1 %v1088_v8  ;;  %v171_v8 = vadd.f32 %v1185_v32, %v1135_v28 }
 0x981   :  { %737 = vmatprep.subr.bf16.mxu1 %v1094_v10 }
 0x984   :  { %738 = vmatpush1.bf16.msra.mxu1 %v1097_v11 }
 0x985   :  { %739 = vmatprep.subr.bf16.mxu1 %v1100_v12 }
 0x988   :  { %740 = vmatpush1.bf16.msra.mxu1 %v1105_v13 }
 0xa3b   :  { %v619_v3 = vpop.f32.mrf.mxu1 }
 0xa3c   :  { %v620_v5 = vadd.f32 %v619_v3, %v169_v1 }
 0xa3d   :  { %v621_v4 = vpop.f32.mrf.mxu1 }
 0xa3e   :  { %v854_v7 = vmul.f32 -1.442695, %v620_v5  ;;  %v622_v10 = vadd.f32 %v621_v4, %v171_v8 }
 0xa3f   :  { %v623_v0 = vpop.f32.mrf.mxu1 }
 0xa40   :  { %950 = vpow2.f32 %v854_v7  ;;  %v855_v31 = vmul.f32 -1.442695, %v622_v10 }
 0xa41   :  { %v624_v6 = vpop.f32.mrf.mxu1  ;;  %952 = vtanh.f32 %v622_v10 }
 0xa4d   :  { %v951_v9 = vpop.eup %950 }
 0xa4e   :  { %v632_v11 = vadd.f32 1.0, %v951_v9  ;;  %v953_v12 = vpop.eup %952 }
 0xa50   :  { %954 = vrcp.f32 %v632_v11 }
 0xa51   :  { %956 = vpow2.f32 %v855_v31 }
 0xa5d   :  { %v955_v13 = vpop.eup %954 }
 0xa5e   :  { %v640_v14 = vmul.f32 %v955_v13, %v953_v12  ;;  %v957_v15 = vpop.eup %956  ;;  %v639_v17 = vmul.f32 %v955_v13, %v575_v59 }
 0xa5f   :  { %v633_v16 = vadd.f32 1.0, %v957_v15 }
 0xa60   :  { %642 = vrot.lane.b32.xlu0 %v640_v14, %s1036_s2 }
 0xa61   :  { %958 = vrcp.f32 %v633_v16 }
 0xa6e   :  { %v959_v32 = vpop.eup %958 }
 0xad2   :  { %v643_v19 = vpop.permute.xlu0 %642 }
 0xad3   :  { %v645_v20 = vadd.f32 %v643_v19, %v639_v17 }
 0xad5   :  { %960 = vtanh.f32 %v645_v20 }
 0xae2   :  { %v961_v21 = vpop.eup %960 }
 0xae3   :  { %v647_v2 = vmul.f32 %v961_v21, %v959_v32 }
 0xae5   :  { %v648_v22 = vpack.c.bf16 %v647_v2, %v647_v2 }
 0xae7   :  { %650 = vrot.lane.b32.xlu1 %v648_v22, %s1036_s2 }
 0xb59   :  { %v651_v23 = vpop.permute.xlu1 %650 }
 0xb5a   :  { %856 = vmatmul.mubr.msk.bf16.vlgmr.msra.gmra.mxu0 %vm231_vm1, %v651_v23 }
 0xc1a   :  { %v689_v25 = vpop.f32.mrf.mxu0 }
 0xc1b   :  { %v690_v26 = vadd.f32 %v689_v25, %v175_v24 }
 0xc1c   :  { %v691_v27 = vpop.f32.mrf.mxu0 }
 0xc1d   :  { %v857_v37 = vmul.f32 -1.442695, %v690_v26  ;;  %v692_v41 = vadd.f32 %v691_v27, %v177_v40 }
 0xc1e   :  { %v693_v38 = vpop.f32.mrf.mxu0 }
 0xc1f   :  { %962 = vpow2.f32 %v857_v37  ;;  %v858_v33 = vmul.f32 -1.442695, %v692_v41 }
 0xc20   :  { %v694_v39 = vpop.f32.mrf.mxu0  ;;  %964 = vtanh.f32 %v692_v41 }
 0xc2c   :  { %v963_v42 = vpop.eup %962 }
 0xc2d   :  { %v702_v43 = vadd.f32 1.0, %v963_v42  ;;  %v965_v44 = vpop.eup %964 }
 0xc2f   :  { %966 = vrcp.f32 %v702_v43 }
 0xc30   :  { %968 = vpow2.f32 %v858_v33 }
 0xc3c   :  { %v967_v45 = vpop.eup %966 }
 0xc3d   :  { %v710_v46 = vmul.f32 %v967_v45, %v965_v44  ;;  %v969_v47 = vpop.eup %968  ;;  %v709_v49 = vmul.f32 %v967_v45, %v645_v20 }
 0xc3e   :  { %v703_v48 = vadd.f32 1.0, %v969_v47 }
 0xc3f   :  { %712 = vrot.lane.b32.xlu0 %v710_v46, %s1036_s2 }
 0xc40   :  { %970 = vrcp.f32 %v703_v48 }
 0xc4d   :  { %v971_v34 = vpop.eup %970 }
 0xcb1   :  { %v713_v50 = vpop.permute.xlu0 %712 }
 0xcb2   :  { %v715_v51 = vadd.f32 %v713_v50, %v709_v49 }
 0xcb4   :  { %972 = vtanh.f32 %v715_v51 }
 0xcc1   :  { %v973_v52 = vpop.eup %972 }
 0xcc2   :  { %v717_v53 = vmul.f32 %v973_v52, %v971_v34 }
 0xcc4   :  { %v718_v54 = vpack.c.bf16 %v717_v53, %v717_v53 }
 0xcc6   :  { %720 = vrot.lane.b32.xlu1 %v718_v54, %s1036_s2 }
 0xd38   :  { %v721_v29 = vpop.permute.xlu1 %720 }
 0xd39   :  { %859 = vmatmul.mubr.msk.bf16.vlgmr.msra.gmra.mxu1 %vm231_vm1, %v721_v29 }
 0xdf9   :  { %v759_v56 = vpop.f32.mrf.mxu1 }
 0xdfa   :  { %v760_v57 = vadd.f32 %v759_v56, %v179_v55 }
 0xdfb   :  { %v761_v58 = vpop.f32.mrf.mxu1 }
 0xdfc   :  { %v860_v59 = vmul.f32 -1.442695, %v760_v57  ;;  %v762_v62 = vadd.f32 %v761_v58, %v181_v61 }
 0xdfd   :  { %v763_v30 = vpop.f32.mrf.mxu1 }
 0xdfe   :  { %974 = vpow2.f32 %v860_v59  ;;  %v861_v18 = vmul.f32 -1.442695, %v762_v62 }
 0xdff   :  { %v764_v60 = vpop.f32.mrf.mxu1  ;;  %976 = vtanh.f32 %v762_v62 }
 0xe0b   :  { %v975_v63 = vpop.eup %974 }
 0xe0c   :  { %v772_v1 = vadd.f32 1.0, %v975_v63  ;;  %v977_v3 = vpop.eup %976 }
 0xe0e   :  { %978 = vrcp.f32 %v772_v1 }
 0xe0f   :  { %980 = vpow2.f32 %v861_v18 }
 0xe1b   :  { %v979_v5 = vpop.eup %978 }
 0xe1c   :  { %v780_v4 = vmul.f32 %v979_v5, %v977_v3  ;;  %v981_v35 = vpop.eup %980  ;;  %v779_v0 = vmul.f32 %v979_v5, %v715_v51 }
 0xe1d   :  { %v773_v7 = vadd.f32 1.0, %v981_v35 }
 0xe1e   :  { %782 = vrot.lane.b32.xlu0 %v780_v4, %s1036_s2 }
 0xe1f   :  { %982 = vrcp.f32 %v773_v7 }
 0xe2c   :  { %v983_v28 = vpop.eup %982 }
 0xe90   :  { %v783_v6 = vpop.permute.xlu0 %782 }
 0xe91   :  { %v785_v8 = vadd.f32 %v783_v6, %v779_v0 }
 0xe93   :  { %984 = vtanh.f32 %v785_v8 }
 0xea0   :  { %v985_v36 = vpop.eup %984 }
 0xea1   :  { %v787_v10 = vmul.f32 %v985_v36, %v983_v28 }
 0xea3   :  { %v788_v9 = vmul.f32 %v787_v10, %v787_v10 }
 0xea5   :  { %790 = vrot.lane.b32.xlu1 %v788_v9, %s1036_s2 }
 0xf17   :  { %v791_v11 = vpop.permute.xlu1 %790 }
 0xf18   :  { %v793_v12 = vsel %vm231_vm1, %v791_v11, 0.0 }
 0xf19   :  { %794 = vadd.xlane.f32.xlu0 %v793_v12 }
 0xfa2   :  { %v795_v13 = vpop.xlane.xlu0 %794 }
 0xfa3   :  { %v796_v14 = vmax.f32 %v795_v13, 1e-24 }
 0xfa5   :  { %986 = vrsqrt.f32 %v796_v14 }
 0xfb2   :  { %v987_v31 = vpop.eup %986 }
 0xfb3   :  { %v798_v15 = vmul.f32 %v987_v31, %v787_v10 }
 0xfb5   :  { %800 = vrot.lane.b32.xlu1 %v798_v15, %s1036_s2 }
0x1027   :  { %v801_v16 = vpop.permute.xlu1 %800 }
0x1028   :  { %803 = vst.msk [vmem:[#allocation5] sm:$0xff] %vm231_vm1, %v801_v16 }
0x1029   :  { %1019 = shalt.err (!%p1016_p9)
}
0x102a   :  { %813 = dma.vmem_to_hbm [thread:$0]  %s811_s12, 128, %s1267_s4, [#allocation4]  }
0x102b   :  { %1030 = dma.done.wait [#allocation4], 128  }
0x102c   :  { %1031 = vsyncadd [#allocation4], 4294967168 }
0x102d   :  { %817 = vsyncpa [#allocation3], 1 }
0x102e   :  { %818 = vsyncpa [#allocation4], 1 }

</bundles_post_ra>
